<compile_context>
chip_gen: v7x
topology: tpu7x:2x2x1
jax: 0.10.0
libtpu: 0.0.40
codegen_flags: <defaults>
</compile_context>

<pallas_src>
import jax
import jax.numpy as jnp
from jax.experimental import pallas as pl
from jax.experimental.pallas import tpu as pltpu


def bert_pooler_kernel(cls_ref, w_ref, b_ref, out_ref):
    # cls_ref: (tile_n, H) compute dtype (f32 or bf16) -- [CLS] rows, this tile
    # w_ref:   (H, H)      compute dtype -- weight pre-transposed to (in, out)
    # b_ref:   (1, H)      f32           -- bias (epilogue stays f32)
    # out_ref: (tile_n, H) output dtype
    y = jnp.dot(cls_ref[...], w_ref[...], preferred_element_type=jnp.float32)
    y = y + b_ref[...]                       # f32 epilogue (VPU)
    out_ref[...] = jnp.tanh(y).astype(out_ref.dtype)   # tanh on EUP, cast at store


def prepare_pooler_params(weight, bias, compute_dtype=jnp.float32):
    """One-time (parameter-load-time) layout/dtype prep — NOT on the per-call path.

    weight: (H_out, H_in) as in nn.Linear; bias: (H_out,).
    Returns (w_t, b2) with w_t = weight.T in `compute_dtype` and b2 in f32.
    """
    w_t = jnp.transpose(jnp.asarray(weight)).astype(compute_dtype)   # (H_in, H_out)
    b2 = jnp.asarray(bias).reshape(1, -1).astype(jnp.float32)        # f32 epilogue
    return w_t, b2


def _round_up(x, m):
    return ((x + m - 1) // m) * m


def _default_num_tensorcores():
    # Best-effort: v7x exposes 2 TensorCores per chip to one Pallas program;
    # v5e / v6e are single-TC.  Any failure just falls back to 1.
    try:
        kind = jax.devices()[0].device_kind.lower()
    except Exception:
        return 1
    return 2 if "v7" in kind else 1


def bert_pooler(state, w_t, b2, *, max_rows_per_step=512, out_dtype=None,
                num_cores=None):
    """state: (N, S, H); w_t: (H_in, H_out) pre-transposed; b2: (1, H_out) f32.

    state should already be in the model's compute dtype (e.g. bf16) so its
    dtype matches w_t — no upcast/copy happens in this wrapper.
    """
    N, S, H = state.shape
    out_dtype = jnp.dtype(out_dtype) if out_dtype is not None else state.dtype
    if num_cores is None:
        num_cores = _default_num_tensorcores()

    # Metadata-only reshape for the default row-major layout: row n of state2d
    # is [state[n,0,:], state[n,1,:], ...].  The CLS BlockSpec below reads only
    # columns [0, H) of each row == state[:, 0, :]; the remaining (S-1)*H
    # columns never leave HBM.  (If the caller can hand over a contiguous
    # (N, H) CLS slab instead, the strided per-row DMA becomes one slab DMA.)
    state2d = state.reshape(N, S * H)

    # Batch tile: as large as possible (per-grid-step overhead ~0.35 us), but on
    # multi-TC parts guarantee >= num_cores steps so "parallel" can shard them.
    tile_n = min(max_rows_per_step, N)
    if num_cores > 1 and N >= 8 * num_cores:
        per_core = _round_up(pl.cdiv(N, num_cores), 8)   # keep sublane alignment
        tile_n = min(tile_n, per_core)
    grid = (pl.cdiv(N, tile_n),)

    # Advisory cost hint so XLA schedules this tiny op well among encoder ops.
    itemsize = jnp.dtype(state.dtype).itemsize
    cost = pl.CostEstimate(
        flops=2 * N * H * H,
        transcendentals=N * H,
        bytes_accessed=(N * H * itemsize                      # CLS rows in
                        + H * H * jnp.dtype(w_t.dtype).itemsize  # weight in
                        + H * 4                                # bias in (f32)
                        + N * H * out_dtype.itemsize),         # output out
    )

    return pl.pallas_call(
        bert_pooler_kernel,
        out_shape=jax.ShapeDtypeStruct((N, H), out_dtype),
        grid_spec=pltpu.PrefetchScalarGridSpec(
            num_scalar_prefetch=0,
            grid=grid,
            in_specs=[
                # [CLS] rows: block index 0 along the (S*H) axis -> columns [0, H).
                pl.BlockSpec((tile_n, H), lambda i: (i, 0)),
                # Grid-invariant weight / bias: fetched once, single-buffered
                # (double-buffering an invariant operand is pure VMEM waste).
                pl.BlockSpec((H, H), lambda i: (0, 0),
                             pipeline_mode=pl.Buffered(1)),
                pl.BlockSpec((1, H), lambda i: (0, 0),
                             pipeline_mode=pl.Buffered(1)),
            ],
            out_specs=pl.BlockSpec((tile_n, H), lambda i: (i, 0)),
        ),
        compiler_params=pltpu.CompilerParams(
            dimension_semantics=("parallel",),
        ),
        cost_estimate=cost,
    )(state2d, w_t, b2)


def reference(state, weight, bias):
    cls_token = state[:, 0, :]
    return jnp.tanh(cls_token @ weight.T + bias)


if __name__ == "__main__":
    # Small shapes consistent with the module: batch=2, seq=8, hidden=128.
    N, S, H = 2, 8, 128

    key = jax.random.PRNGKey(0)
    k_state, k_w, k_b = jax.random.split(key, 3)

    state = jax.random.normal(k_state, (N, S, H), dtype=jnp.float32)
    # nn.Linear default init: U(-1/sqrt(fan_in), 1/sqrt(fan_in)) for weight & bias.
    bound = 1.0 / (H ** 0.5)
    weight = jax.random.uniform(
        k_w, (H, H), minval=-bound, maxval=bound, dtype=jnp.float32
    )
    bias = jax.random.uniform(
        k_b, (H,), minval=-bound, maxval=bound, dtype=jnp.float32
    )

    ref = reference(state, weight, bias)

    # --- f32 path (matches the PyTorch module's default dtype exactly) ---
    w_t32, b2 = prepare_pooler_params(weight, bias, compute_dtype=jnp.float32)
    out_f32 = jax.block_until_ready(bert_pooler(state, w_t32, b2))
    assert out_f32.shape == (N, H)
    assert jnp.allclose(out_f32, ref, atol=1e-5, rtol=1e-5), "f32 mismatch vs reference"

    # --- bf16 path (MXU-native operands, f32 accumulation/epilogue, bf16 out) ---
    w_t16, _ = prepare_pooler_params(weight, bias, compute_dtype=jnp.bfloat16)
    state_bf16 = state.astype(jnp.bfloat16)
    out_bf16 = jax.block_until_ready(
        bert_pooler(state_bf16, w_t16, b2, out_dtype=jnp.bfloat16)
    )
    assert out_bf16.shape == (N, H)
    assert out_bf16.dtype == jnp.bfloat16
    assert jnp.allclose(out_bf16.astype(jnp.float32), ref, atol=3e-2, rtol=3e-2), \
        "bf16 mismatch vs reference"

    print("KERNEL_OK")
</pallas_src>

<mosaic_0001>
module attributes {stable_mosaic.version = 11 : i64} {
  func.func @bert_pooler_kernel(%arg0: i32, %arg1: memref<2x128xf32, #tpu.memory_space<vmem>>, %arg2: memref<128x128xf32, #tpu.memory_space<vmem>>, %arg3: memref<1x128xf32, #tpu.memory_space<vmem>>, %arg4: memref<2x128xf32, #tpu.memory_space<vmem>>) attributes {dimension_semantics = [#tpu.dimension_semantics<parallel>], iteration_bounds = array<i64: 1>, scalar_prefetch = 0 : i64, scratch_operands = 0 : i64, tpu.core_type = #tpu.core_type<tc>, window_params = [{transform_indices = @transform_0, window_bounds = array<i64: 2, 128>}, {pipeline_mode = #tpu.pipeline_mode<synchronous>, transform_indices = @transform_1, window_bounds = array<i64: 128, 128>}, {pipeline_mode = #tpu.pipeline_mode<synchronous>, transform_indices = @transform_2, window_bounds = array<i64: 1, 128>}, {transform_indices = @transform_3, window_bounds = array<i64: 2, 128>}]} {
    %c0 = arith.constant 0 : index
    %c0_0 = arith.constant 0 : index
    %0 = vector.load %arg1[%c0, %c0_0] : memref<2x128xf32, #tpu.memory_space<vmem>>, vector<2x128xf32>
    %c0_1 = arith.constant 0 : index
    %c0_2 = arith.constant 0 : index
    %1 = vector.load %arg2[%c0_1, %c0_2] : memref<128x128xf32, #tpu.memory_space<vmem>>, vector<128x128xf32>
    %cst = arith.constant dense<0.000000e+00> : vector<2x128xf32>
    %2 = tpu.matmul %0, %1, %cst {dimension_numbers = #tpu.dot_dimension_numbers<[1], [0], [0], [1], [0, 0, 1, 1], [], []>} : vector<2x128xf32>, vector<128x128xf32>, vector<2x128xf32> -> vector<2x128xf32>
    %c0_3 = arith.constant 0 : index
    %c0_4 = arith.constant 0 : index
    %3 = vector.load %arg3[%c0_3, %c0_4] : memref<1x128xf32, #tpu.memory_space<vmem>>, vector<1x128xf32>
    %4 = vector.broadcast %3 : vector<1x128xf32> to vector<2x128xf32>
    %5 = arith.addf %2, %4 : vector<2x128xf32>
    %6 = math.tanh %5 : vector<2x128xf32>
    %c0_5 = arith.constant 0 : index
    %c0_6 = arith.constant 0 : index
    %7 = vector.load %arg4[%c0_5, %c0_6] : memref<2x128xf32, #tpu.memory_space<vmem>>, vector<2x128xf32>
    tpu.vector_store %arg4[%c0_5, %c0_6], %6 {strides = array<i32>} : memref<2x128xf32, #tpu.memory_space<vmem>>, vector<2x128xf32>,
    return
  }
  func.func @transform_0(%arg0: i32) -> (i32, i32) {
    %c0_i32 = arith.constant 0 : i32
    %c0_i32_0 = arith.constant 0 : i32
    return %arg0, %c0_i32 : i32, i32
  }
  func.func @transform_1(%arg0: i32) -> (i32, i32) {
    %c0_i32 = arith.constant 0 : i32
    %c0_i32_0 = arith.constant 0 : i32
    %c0_i32_1 = arith.constant 0 : i32
    return %c0_i32, %c0_i32_0 : i32, i32
  }
  func.func @transform_2(%arg0: i32) -> (i32, i32) {
    %c0_i32 = arith.constant 0 : i32
    %c0_i32_0 = arith.constant 0 : i32
    %c0_i32_1 = arith.constant 0 : i32
    return %c0_i32, %c0_i32_0 : i32, i32
  }
  func.func @transform_3(%arg0: i32) -> (i32, i32) {
    %c0_i32 = arith.constant 0 : i32
    %c0_i32_0 = arith.constant 0 : i32
    return %arg0, %c0_i32 : i32, i32
  }
}

</mosaic_0001>

<bundles_post_ra>
// kernel: tpu_custom_call.1
= control target key start
LH: loop header
LB: loop body
LE: loop exit
PB: predicated region body
PF: predicated region fallthrough
CT: control target
= control target key end

     0   :  { %8 = vsyncpa [#allocation3], 0  ;;  %s389_s0 = inlined_call_operand.hbm [shape: f32[2,1024], index: 0, kind: input, shape index: {}]   ;;  %s390_s1 = inlined_call_operand.hbm [shape: f32[128,128], index: 1, kind: input, shape index: {}]   ;;  %s391_s2 = inlined_call_operand.vmem [shape: f32[1,128], index: 2, kind: input, shape index: {}]   ;;  %s392_s3 = inlined_call_operand.hbm [shape: f32[2,128], index: 3, kind: output, shape index: {}]  }
   0x1   :  { %9 = vsyncpa [#allocation6], 0 }
   0x2   :  { %10 = vsyncpa [#allocation4], 0  ;;  %s312_s12 = smov [#allocation2]   ;;  %s313_s14 = smov [#allocation5]  }
   0x3   :  { %s17_s13 = sshll.u32 %s312_s12, 4  ;;  %s26_s15 = sshll.u32 %s313_s14, 4  ;;  %s18_s13 = int_to_ptr.vmem [resolvable:$true] %s17_s13  ;;  %s340_s15 = int_to_ptr.vmem [resolvable:$true] %s26_s15 }
   0x4   :  { %s240_s18 = scalar_lea.hbm %s389_s0, 32  ;;  %s242_s23 = scalar_lea.hbm %s389_s0, 256 }
   0x5   :  { %p241_p0 = scmp.ne.s32.totalorder %s389_s0, %s240_s18  ;;  %p243_p1 = scmp.lt.u32.totalorder %s242_s23, %s240_s18 }
   0x6   :  { %p244_p2 = scmp.lt.u32.totalorder %s240_s18, %s389_s0 }
   0x8   :  { %p245_p3 = por %p244_p2, %p243_p1 }
   0xa   :  { %p246_p4 = pnand %p245_p3, %p241_p0 }
   0xc   :  { %249 = shalt.err (!%p246_p4)
}
   0xd   :  { %s250_s26 = scalar_lea.vmem %s18_s13, 32  ;;  %p255_p6 = scmp.lt.s32.totalorder %s18_s13, %s18_s13 }
   0xe   :  { %p251_p5 = scmp.ne.s32.totalorder %s18_s13, %s250_s26  ;;  %p256_p7 = scmp.lt.s32.totalorder %s250_s26, %s250_s26 }
  0x10   :  { %p257_p8 = por %p256_p7, %p255_p6 }
  0x12   :  { %p258_p9 = pnand %p257_p8, %p251_p5 }
  0x14   :  { %261 = shalt.err (!%p258_p9)
}
  0x15   :  { %20 = dma.hbm_to_vmem [thread:$0]  %s389_s0, 32, %s18_s13, [#allocation3]  }
  0x16   :  { %s262_s4 = scalar_lea.hbm %s390_s1, 2048 }
  0x17   :  { %p263_p10 = scmp.ne.s32.totalorder %s390_s1, %s262_s4  ;;  %p266_p11 = scmp.lt.u32.totalorder %s262_s4, %s390_s1 }
  0x19   :  { %p268_p12 = pnand %p266_p11, %p263_p10 }
  0x1b   :  { %271 = shalt.err (!%p268_p12)
}
  0x1c   :  { %s272_s9 = scalar_lea.vmem %s340_s15, 2048  ;;  %p277_p0 = scmp.lt.s32.totalorder %s340_s15, %s340_s15 }
  0x1d   :  { %p273_p13 = scmp.ne.s32.totalorder %s340_s15, %s272_s9  ;;  %p278_p1 = scmp.lt.s32.totalorder %s272_s9, %s272_s9 }
  0x1f   :  { %p279_p2 = por %p278_p1, %p277_p0 }
  0x21   :  { %p280_p3 = pnand %p279_p2, %p273_p13 }
  0x23   :  { %283 = shalt.err (!%p280_p3)
}
  0x24   :  { %s314_s0 = smov 128   ;;  %s315_s10 = smov 8  }
  0x25   :  { %32 = dma.hbm_to_vmem [thread:$0]  %s390_s1, 2048, %s340_s15, [#allocation6], %s314_s0, %s314_s0, %s315_s10  }
  0x26   :  { %306 = dma.done.wait [#allocation3], 32  }
  0x27   :  { %307 = vsyncadd [#allocation3], 4294967264 }
  0x28   :  { %308 = dma.done.wait [#allocation6], 2048  }
  0x29   :  { %309 = vsyncadd [#allocation6], 4294965248  ;;  %v316_v0 = vmov 0.0|0.0   ;;  %vm317_vm0 = vmmov 0   ;;  %v318_v1 = vmov 0.0   ;;  %v42_v2 = vld [vmem:[#allocation5] sm:$0xff] }
  0x2a   :  { %206 = vmatprep.subr.bf16.mxu0 %v316_v0  ;;  %203 = vmatprep.mubr.msk.f32.mxu0 %vm317_vm0, %v318_v1  ;;  %v43_v3 = vld [vmem:[#allocation5 + $0x8] sm:$0xff]  ;;  %v44_v4 = vld [vmem:[#allocation5 + $0x10] sm:$0xff]  ;;  %v45_v6 = vld [vmem:[#allocation5 + $0x18] sm:$0xff]  ;;  %s319_s14 = smov [#allocation7]  }
  0x2b   :  { %v207_v5 = vpack.c.bf16 %v43_v3, %v42_v2  ;;  %v210_v7 = vpack.c.bf16 %v45_v6, %v44_v4  ;;  %v46_v8 = vld [vmem:[#allocation5 + $0x20] sm:$0xff]  ;;  %v47_v9 = vld [vmem:[#allocation5 + $0x28] sm:$0xff]  ;;  %v48_v11 = vld [vmem:[#allocation5 + $0x30] sm:$0xff]  ;;  %s143_s15 = sshll.u32 %s319_s14, 4  ;;  %s144_s15 = int_to_ptr.vmem [resolvable:$true] %s143_s15 }
  0x2c   :  { %v213_v10 = vpack.c.bf16 %v47_v9, %v46_v8  ;;  %v49_v12 = vld [vmem:[#allocation5 + $0x38] sm:$0xff]  ;;  %v50_v14 = vld [vmem:[#allocation5 + $0x40] sm:$0xff]  ;;  %v51_v15 = vld [vmem:[#allocation5 + $0x48] sm:$0xff]  ;;  %s284_s16 = scalar_lea.vmem %s144_s15, 32  ;;  %p289_p5 = scmp.lt.s32.totalorder %s144_s15, %s144_s15 }
  0x2d   :  { %208 = vmatpush3.bf16.msra.mxu0 %v207_v5  ;;  %v216_v13 = vpack.c.bf16 %v49_v12, %v48_v11  ;;  %v219_v16 = vpack.c.bf16 %v51_v15, %v50_v14  ;;  %v52_v17 = vld [vmem:[#allocation5 + $0x50] sm:$0xff]  ;;  %v53_v18 = vld [vmem:[#allocation5 + $0x58] sm:$0xff]  ;;  %v54_v20 = vld [vmem:[#allocation5 + $0x60] sm:$0xff]  ;;  %p285_p4 = scmp.ne.s32.totalorder %s144_s15, %s284_s16  ;;  %p290_p6 = scmp.lt.s32.totalorder %s284_s16, %s284_s16 }
  0x2e   :  { %209 = vmatprep.subr.bf16.mxu0 %v316_v0  ;;  %v222_v19 = vpack.c.bf16 %v53_v18, %v52_v17  ;;  %v55_v21 = vld [vmem:[#allocation5 + $0x68] sm:$0xff]  ;;  %v56_v23 = vld [vmem:[#allocation5 + $0x70] sm:$0xff]  ;;  %v57_v24 = vld [vmem:[#allocation5 + $0x78] sm:$0xff] }
  0x2f   :  { %v225_v22 = vpack.c.bf16 %v55_v21, %v54_v20  ;;  %v228_v25 = vpack.c.bf16 %v57_v24, %v56_v23  ;;  %v41_v26 = vld [vmem:[#allocation2] sm:$0x3]  ;;  %p291_p7 = por %p290_p6, %p289_p5 }
  0x30   :  { %v153_v27 = vld [vmem:[%s391_s2] ss:$0 sm:$0xff] }
  0x31   :  { %211 = vmatpush3.bf16.msra.mxu0 %v210_v7  ;;  %p292_p8 = pnand %p291_p7, %p285_p4 }
  0x32   :  { %212 = vmatprep.subr.bf16.mxu0 %v316_v0 }
  0x35   :  { %214 = vmatpush3.bf16.msra.mxu0 %v213_v10 }
  0x36   :  { %215 = vmatprep.subr.bf16.mxu0 %v316_v0 }
  0x39   :  { %217 = vmatpush3.bf16.msra.mxu0 %v216_v13 }
  0x3a   :  { %218 = vmatprep.subr.bf16.mxu0 %v316_v0 }
  0x3d   :  { %220 = vmatpush3.bf16.msra.mxu0 %v219_v16 }
  0x3e   :  { %221 = vmatprep.subr.bf16.mxu0 %v316_v0 }
  0x41   :  { %223 = vmatpush3.bf16.msra.mxu0 %v222_v19 }
  0x42   :  { %224 = vmatprep.subr.bf16.mxu0 %v316_v0 }
  0x45   :  { %226 = vmatpush3.bf16.msra.mxu0 %v225_v22 }
  0x46   :  { %227 = vmatprep.subr.bf16.mxu0 %v316_v0 }
  0x49   :  { %229 = vmatpush3.bf16.msra.mxu0 %v228_v25 }
  0x4c   :  { %204 = vmatmul.mubr.f32.vlgmr.msra.gmra.mrb[0].mxu0 %v41_v26 }
 0x11f   :  { %v131_v28 = vpop.f32.mrb[0].mxu0 }
 0x120   :  { %v132_v29 = vadd.f32 %v153_v27, %v131_v28  ;;  %v205_v30 = vpop.f32.mrb[1].mxu0 }
 0x122   :  { %238 = vtanh.f32 %v132_v29 }
 0x12c   :  { %v239_v31 = vpop.eup %238 }
 0x12d   :  { %136 = vst [vmem:[#allocation7] sm:$0x3] %v239_v31 }
 0x12e   :  { %295 = shalt.err (!%p292_p8)
}
 0x12f   :  { %s296_s2 = scalar_lea.hbm %s392_s3, 32 }
 0x130   :  { %p297_p9 = scmp.ne.s32.totalorder %s392_s3, %s296_s2  ;;  %p300_p10 = scmp.lt.u32.totalorder %s296_s2, %s392_s3 }
 0x132   :  { %p302_p11 = pnand %p300_p10, %p297_p9 }
 0x134   :  { %305 = shalt.err (!%p302_p11)
}
 0x135   :  { %146 = dma.vmem_to_hbm [thread:$0]  %s144_s15, 32, %s392_s3, [#allocation4]  }
 0x136   :  { %310 = dma.done.wait [#allocation4], 32  }
 0x137   :  { %311 = vsyncadd [#allocation4], 4294967264 }
 0x138   :  { %150 = vsyncpa [#allocation3], 1 }
 0x139   :  { %151 = vsyncpa [#allocation6], 1 }
 0x13a   :  { %152 = vsyncpa [#allocation4], 1 }

</bundles_post_ra>
